<compile_context>
chip_gen: v7x
topology: tpu7x:2x2x1
jax: 0.10.0
libtpu: 0.0.40
codegen_flags: <defaults>
</compile_context>

<pallas_src>
import jax
import jax.numpy as jnp
from jax import lax
from jax.experimental import pallas as pl
from jax.experimental.pallas import tpu as pltpu


def _round_up(v, m):
    return (v + m - 1) // m * m


# ---------------------------------------------------------------------------
# Kernels: one row-tile of   out[rows] = scale[rows] * (A'[rows, :] @ src)
# A' is streamed as int8 row tiles (upcast to bf16 on-chip, exact for small
# integer edge counts); src is a resident bf16 hi/lo pair (near-f32 accuracy
# at bf16 MXU rate, f32 accumulation).
# ---------------------------------------------------------------------------


def _propagate(adj_ref, src_hi_ref, src_lo_ref, scale_ref):
    adj_b = adj_ref[...].astype(jnp.bfloat16)          # int8 -> bf16 (lossless)
    acc = jnp.dot(adj_b, src_hi_ref[...], preferred_element_type=jnp.float32)
    acc = acc + jnp.dot(adj_b, src_lo_ref[...], preferred_element_type=jnp.float32)
    return scale_ref[...] * acc                         # (tm,1) * (tm,c_pad)


def propagate_kernel_f32(adj_ref, src_hi_ref, src_lo_ref, scale_ref, out_ref):
    out_ref[...] = _propagate(adj_ref, src_hi_ref, src_lo_ref, scale_ref)


def propagate_kernel_split(adj_ref, src_hi_ref, src_lo_ref, scale_ref,
                           out_hi_ref, out_lo_ref):
    acc = _propagate(adj_ref, src_hi_ref, src_lo_ref, scale_ref)
    hi = acc.astype(jnp.bfloat16)
    out_hi_ref[...] = hi
    out_lo_ref[...] = (acc - hi.astype(jnp.float32)).astype(jnp.bfloat16)


def _propagation_pass(adj_p, src_hi, src_lo, scale, *, tm, split_output,
                      vmem_limit):
    n_pad, c_pad = src_hi.shape
    n_tiles = n_pad // tm

    in_specs = [
        pl.BlockSpec((tm, n_pad), lambda i: (i, 0)),      # adj row tile (streamed)
        pl.BlockSpec((n_pad, c_pad), lambda i: (0, 0)),   # src hi (resident)
        pl.BlockSpec((n_pad, c_pad), lambda i: (0, 0)),   # src lo (resident)
        pl.BlockSpec((tm, 1), lambda i: (i, 0)),          # per-row scale tile
    ]
    out_block = pl.BlockSpec((tm, c_pad), lambda i: (i, 0))

    if split_output:
        kernel = propagate_kernel_split
        out_shape = (jax.ShapeDtypeStruct((n_pad, c_pad), jnp.bfloat16),
                     jax.ShapeDtypeStruct((n_pad, c_pad), jnp.bfloat16))
        out_specs = (out_block, out_block)
    else:
        kernel = propagate_kernel_f32
        out_shape = jax.ShapeDtypeStruct((n_pad, c_pad), jnp.float32)
        out_specs = out_block

    return pl.pallas_call(
        kernel,
        out_shape=out_shape,
        grid=(n_tiles,),
        in_specs=in_specs,
        out_specs=out_specs,
        compiler_params=pltpu.CompilerParams(
            dimension_semantics=("parallel",),   # row tiles are independent
            vmem_limit_bytes=vmem_limit,
        ),
    )(adj_p, src_hi, src_lo, scale)


def sgc_forward(x, edge_index, weights):
    """x: (N, F) f32, edge_index: (2, E) int32, weights: (F, C_out) f32.
    Returns (N, C_out) f32 = lap @ lap @ x @ W (self-loops added iff diag==0)."""
    n, _ = x.shape
    c_out = weights.shape[1]
    c_pad = _round_up(c_out, 128)                 # lane-dense intermediates/output

    # ---- tile size & explicit VMEM budget (v7x: 64 MiB physical) ----
    def _vmem_need(tm, n_pad):
        return (2 * tm * n_pad                    # adj int8 double buffer
                + 2 * 2 * n_pad * c_pad * 2       # src hi/lo bf16 (2 bufs each)
                + 2 * tm * 128 * 4                # scale tile (lane padded)
                + 2 * 2 * tm * c_pad * 4)         # out tiles (f32 worst case)

    tm = min(512, _round_up(n, 128))
    while tm > 128 and _vmem_need(tm, _round_up(n, tm)) > (40 << 20):
        tm //= 2
    n_pad = _round_up(n, tm)
    vmem_limit = int(max(_vmem_need(tm, n_pad) + (8 << 20), 32 << 20))

    # ---- plain-JAX glue: int8 padded adjacency (self-loops baked in), degrees ----
    src, dst = edge_index[0], edge_index[1]
    # add self-loops iff diagonal is all zero  <=>  no edge has src == dst
    add_self_loops = jnp.logical_not(jnp.any(src == dst))
    flag_f = add_self_loops.astype(jnp.float32)

    # TODO(synk): int8 adjacency assumes per-(src,dst) edge multiplicity <= 127.
    adj_p = jnp.zeros((n_pad, n_pad), jnp.int8).at[src, dst].add(jnp.int8(1))
    diag = jnp.arange(n, dtype=jnp.int32)
    adj_p = adj_p.at[diag, diag].add(add_self_loops.astype(jnp.int8))

    deg = jnp.zeros((n,), jnp.float32).at[src].add(1.0) + flag_f
    d_inv_sqrt = jnp.where(deg > 0.0, deg ** -0.5, 0.0)          # inf -> 0
    d_col = jnp.pad(d_inv_sqrt, (0, n_pad - n)).reshape(n_pad, 1)

    # ---- hoisted feature transform: t0 = D^{-1/2} (x @ W)  (tiny O(N F C) GEMM) ----
    xw = jnp.matmul(x, weights, precision=lax.Precision.HIGHEST)
    t0 = jnp.pad(d_inv_sqrt[:, None] * xw, ((0, n_pad - n), (0, c_pad - c_out)))
    t0_hi = t0.astype(jnp.bfloat16)
    t0_lo = (t0 - t0_hi.astype(jnp.float32)).astype(jnp.bfloat16)

    # ---- pass 0: t1 = D^{-1} A' t0  (stored as bf16 hi/lo slabs) ----
    t1_hi, t1_lo = _propagation_pass(
        adj_p, t0_hi, t0_lo, d_col * d_col,
        tm=tm, split_output=True, vmem_limit=vmem_limit)

    # ---- pass 1: out = D^{-1/2} A' t1 ----
    out_p = _propagation_pass(
        adj_p, t1_hi, t1_lo, d_col,
        tm=tm, split_output=False, vmem_limit=vmem_limit)

    return out_p[:n, :c_out]


# ---------------------------------------------------------------------------
# Pure-JAX reference mirroring the PyTorch forward.
# ---------------------------------------------------------------------------


def reference_forward(x, edge_index, weights):
    n = x.shape[0]
    adj = jnp.zeros((n, n), jnp.float32).at[edge_index[0], edge_index[1]].add(1.0)
    diag = jnp.diagonal(adj)
    adj = jnp.where(jnp.all(diag == 0.0), adj + jnp.eye(n, dtype=adj.dtype), adj)
    deg = adj.sum(1)
    d_inv_sqrt = jnp.where(deg > 0.0, deg ** -0.5, 0.0)
    lap = d_inv_sqrt[:, None] * adj * d_inv_sqrt[None, :]
    hp = lax.Precision.HIGHEST
    lap_x = jnp.matmul(lap, jnp.matmul(lap, x, precision=hp), precision=hp)
    return jnp.matmul(lap_x, weights, precision=hp)


if __name__ == "__main__":
    key = jax.random.PRNGKey(0)
    k_x, k_e, k_w = jax.random.split(key, 3)

    num_nodes = 200      # N (not a multiple of 128 -> exercises padding path)
    in_channels = 16     # F
    out_channels = 8     # C_out
    num_edges = 600

    # deterministic synthetic graph + features
    x = jax.random.normal(k_x, (num_nodes, in_channels), jnp.float32)
    edge_index = jax.random.randint(k_e, (2, num_edges), 0, num_nodes, jnp.int32)

    # deterministic weight init, shape (in_channels, out_channels)
    bound = 1.0 / jnp.sqrt(jnp.float32(in_channels))
    weights = jax.random.uniform(
        k_w, (in_channels, out_channels), jnp.float32, -bound, bound)

    out = sgc_forward(x, edge_index, weights)
    out = jax.block_until_ready(out)

    ref = reference_forward(x, edge_index, weights)
    assert out.shape == (num_nodes, out_channels)
    err = float(jnp.max(jnp.abs(out - ref)))
    assert jnp.allclose(out, ref, atol=1e-4, rtol=1e-4), err

    print("KERNEL_OK")
</pallas_src>

<mosaic_0001>
module attributes {stable_mosaic.version = 11 : i64} {
  func.func @propagate_kernel_split(%arg0: i32, %arg1: memref<256x256xi8, #tpu.memory_space<vmem>>, %arg2: memref<256x128xbf16, #tpu.memory_space<vmem>>, %arg3: memref<256x128xbf16, #tpu.memory_space<vmem>>, %arg4: memref<256x1xf32, #tpu.memory_space<vmem>>, %arg5: memref<256x128xbf16, #tpu.memory_space<vmem>>, %arg6: memref<256x128xbf16, #tpu.memory_space<vmem>>) attributes {dimension_semantics = [#tpu.dimension_semantics<parallel>], iteration_bounds = array<i64: 1>, scalar_prefetch = 0 : i64, scratch_operands = 0 : i64, tpu.core_type = #tpu.core_type<tc>, window_params = [{transform_indices = @transform_0, window_bounds = array<i64: 256, 256>}, {pipeline_mode = #tpu.pipeline_mode<synchronous>, transform_indices = @transform_1, window_bounds = array<i64: 256, 128>}, {pipeline_mode = #tpu.pipeline_mode<synchronous>, transform_indices = @transform_2, window_bounds = array<i64: 256, 128>}, {transform_indices = @transform_3, window_bounds = array<i64: 256, 1>}, {transform_indices = @transform_4, window_bounds = array<i64: 256, 128>}, {transform_indices = @transform_5, window_bounds = array<i64: 256, 128>}]} {
    %c0 = arith.constant 0 : index
    %c0_0 = arith.constant 0 : index
    %0 = vector.load %arg1[%c0, %c0_0] : memref<256x256xi8, #tpu.memory_space<vmem>>, vector<256x256xi8>
    %1 = arith.sitofp %0 : vector<256x256xi8> to vector<256x256xbf16>
    %c0_1 = arith.constant 0 : index
    %c0_2 = arith.constant 0 : index
    %2 = vector.load %arg2[%c0_1, %c0_2] : memref<256x128xbf16, #tpu.memory_space<vmem>>, vector<256x128xbf16>
    %cst = arith.constant dense<0.000000e+00> : vector<256x128xf32>
    %3 = tpu.matmul %1, %2, %cst {dimension_numbers = #tpu.dot_dimension_numbers<[1], [0], [0], [1], [0, 0, 1, 1], [], []>} : vector<256x256xbf16>, vector<256x128xbf16>, vector<256x128xf32> -> vector<256x128xf32>
    %c0_3 = arith.constant 0 : index
    %c0_4 = arith.constant 0 : index
    %4 = vector.load %arg3[%c0_3, %c0_4] : memref<256x128xbf16, #tpu.memory_space<vmem>>, vector<256x128xbf16>
    %cst_5 = arith.constant dense<0.000000e+00> : vector<256x128xf32>
    %5 = tpu.matmul %1, %4, %cst_5 {dimension_numbers = #tpu.dot_dimension_numbers<[1], [0], [0], [1], [0, 0, 1, 1], [], []>} : vector<256x256xbf16>, vector<256x128xbf16>, vector<256x128xf32> -> vector<256x128xf32>
    %6 = arith.addf %3, %5 : vector<256x128xf32>
    %c0_6 = arith.constant 0 : index
    %c0_7 = arith.constant 0 : index
    %7 = vector.load %arg4[%c0_6, %c0_7] : memref<256x1xf32, #tpu.memory_space<vmem>>, vector<256x1xf32>
    %8 = vector.broadcast %7 : vector<256x1xf32> to vector<256x128xf32>
    %9 = arith.mulf %8, %6 : vector<256x128xf32>
    %10 = arith.truncf %9 : vector<256x128xf32> to vector<256x128xbf16>
    %c0_8 = arith.constant 0 : index
    %c0_9 = arith.constant 0 : index
    %11 = vector.load %arg5[%c0_8, %c0_9] : memref<256x128xbf16, #tpu.memory_space<vmem>>, vector<256x128xbf16>
    tpu.vector_store %arg5[%c0_8, %c0_9], %10 {strides = array<i32>} : memref<256x128xbf16, #tpu.memory_space<vmem>>, vector<256x128xbf16>,
    %12 = arith.extf %10 : vector<256x128xbf16> to vector<256x128xf32>
    %13 = arith.subf %9, %12 : vector<256x128xf32>
    %14 = arith.truncf %13 : vector<256x128xf32> to vector<256x128xbf16>
    %c0_10 = arith.constant 0 : index
    %c0_11 = arith.constant 0 : index
    %15 = vector.load %arg6[%c0_10, %c0_11] : memref<256x128xbf16, #tpu.memory_space<vmem>>, vector<256x128xbf16>
    tpu.vector_store %arg6[%c0_10, %c0_11], %14 {strides = array<i32>} : memref<256x128xbf16, #tpu.memory_space<vmem>>, vector<256x128xbf16>,
    return
  }
  func.func @transform_0(%arg0: i32) -> (i32, i32) {
    %c0_i32 = arith.constant 0 : i32
    %c0_i32_0 = arith.constant 0 : i32
    return %arg0, %c0_i32 : i32, i32
  }
  func.func @transform_1(%arg0: i32) -> (i32, i32) {
    %c0_i32 = arith.constant 0 : i32
    %c0_i32_0 = arith.constant 0 : i32
    %c0_i32_1 = arith.constant 0 : i32
    return %c0_i32, %c0_i32_0 : i32, i32
  }
  func.func @transform_2(%arg0: i32) -> (i32, i32) {
    %c0_i32 = arith.constant 0 : i32
    %c0_i32_0 = arith.constant 0 : i32
    %c0_i32_1 = arith.constant 0 : i32
    return %c0_i32, %c0_i32_0 : i32, i32
  }
  func.func @transform_3(%arg0: i32) -> (i32, i32) {
    %c0_i32 = arith.constant 0 : i32
    %c0_i32_0 = arith.constant 0 : i32
    return %arg0, %c0_i32 : i32, i32
  }
  func.func @transform_4(%arg0: i32) -> (i32, i32) {
    %c0_i32 = arith.constant 0 : i32
    %c0_i32_0 = arith.constant 0 : i32
    return %arg0, %c0_i32 : i32, i32
  }
  func.func @transform_5(%arg0: i32) -> (i32, i32) {
    %c0_i32 = arith.constant 0 : i32
    %c0_i32_0 = arith.constant 0 : i32
    return %arg0, %c0_i32 : i32, i32
  }
}

</mosaic_0001>

<bundles_post_ra>
// kernel: tpu_custom_call.1
= control target key start
LH: loop header
LB: loop body
LE: loop exit
PB: predicated region body
PF: predicated region fallthrough
CT: control target
= control target key end

     0   :  { %11 = vsyncpa [#allocation3], 0  ;;  %s2262_s0 = inlined_call_operand.vmem [shape: s8[256,256], index: 0, kind: input, shape index: {}]   ;;  %s2263_s1 = inlined_call_operand.vmem [shape: bf16[256,128], index: 1, kind: input, shape index: {}]   ;;  %s2264_s2 = inlined_call_operand.hbm [shape: bf16[256,128], index: 2, kind: input, shape index: {}]   ;;  %s2265_s3 = inlined_call_operand.vmem [shape: f32[256,1], index: 3, kind: input, shape index: {}]   ;;  %s2266_s4 = inlined_call_operand.hbm [shape: bf16[256,128], index: 4, kind: output, shape index: {0}]   ;;  %s2267_s5 = inlined_call_operand.hbm [shape: bf16[256,128], index: 5, kind: output, shape index: {1}]  }
   0x1   :  { %12 = vsyncpa [#allocation4], 0 }
   0x2   :  { %13 = vsyncpa [#allocation7], 0  ;;  %s1989_s18 = smov [#allocation2]   ;;  %s1917_s22 = scalar_lea.hbm %s2264_s2, 2048 }
   0x3   :  { %s23_s19 = sshll.u32 %s1989_s18, 4  ;;  %p1918_p0 = scmp.ne.s32.totalorder %s2264_s2, %s1917_s22  ;;  %s24_s19 = int_to_ptr.vmem [resolvable:$true] %s23_s19 }
   0x4   :  { %p1921_p1 = scmp.lt.u32.totalorder %s1917_s22, %s2264_s2 }
   0x6   :  { %p1923_p2 = pnand %p1921_p1, %p1918_p0 }
   0x8   :  { %1926 = shalt.err (!%p1923_p2)
}
   0x9   :  { %s1927_s27 = scalar_lea.vmem %s24_s19, 2048  ;;  %p1932_p4 = scmp.lt.s32.totalorder %s24_s19, %s24_s19 }
   0xa   :  { %p1928_p3 = scmp.ne.s32.totalorder %s24_s19, %s1927_s27  ;;  %p1933_p5 = scmp.lt.s32.totalorder %s1927_s27, %s1927_s27 }
   0xc   :  { %p1934_p6 = por %p1933_p5, %p1932_p4 }
   0xe   :  { %p1935_p7 = pnand %p1934_p6, %p1928_p3 }
  0x10   :  { %1938 = shalt.err (!%p1935_p7)
}
  0x11   :  { %s1990_s28 = smov 64   ;;  %s1991_s29 = smov 4  }
  0x12   :  { %29 = dma.hbm_to_vmem [thread:$0]  %s2264_s2, 2048, %s24_s19, [#allocation3], %s1990_s28, %s1990_s28, %s1991_s29  }
  0x13   :  { %1983 = dma.done.wait [#allocation3], 2048  }
  0x14   :  { %1984 = vsyncadd [#allocation3], 4294965248  ;;  %v1992_v0 = vmov 0   ;;  %v1885_v1 = vld [vmem:[#allocation2 + $0x40] sm:$0xff]   ;;  %v1889_v5 = vld [vmem:[#allocation2 + $0x48] sm:$0xff]   ;;  %s1994_s2 = smov [#allocation6]  }
  0x15   :  { %1883 = vset.pattern.permute.xlu0 %v1992_v0  ;;  %1884 = vset.pattern.permute.xlu1 %v1992_v0  ;;  %v1886_v2 = vld [vmem:[%s2263_s1 + $0x40] sm:$0xff]   ;;  %v1890_v6 = vld [vmem:[%s2263_s1 + $0x48] sm:$0xff]   ;;  %v1893_v9 = vld [vmem:[#allocation2 + $0x50] sm:$0xff]   ;;  %s1287_s11 = sshll.u32 %s1994_s2, 4  ;;  %s1288_s11 = int_to_ptr.vmem [resolvable:$true] %s1287_s11 }
  0x16   :  { %1653 = vmatprep.subr.bf16.mxu0 %v1885_v1  ;;  %v1887_v3 = vld [vmem:[#allocation2] sm:$0xff]   ;;  %1765 = vmatprep.subr.bf16.mxu1 %v1886_v2  ;;  %v1891_v7 = vld [vmem:[#allocation2 + $0x8] sm:$0xff]   ;;  %v1894_v10 = vld [vmem:[%s2263_s1 + $0x50] sm:$0xff]  }
  0x17   :  { %v1888_v4 = vld [vmem:[%s2263_s1] sm:$0xff]   ;;  %1654 = vmatpush3.bf16.msra.mxu0 %v1887_v3  ;;  %v1892_v8 = vld [vmem:[%s2263_s1 + $0x8] sm:$0xff]   ;;  %v1895_v11 = vld [vmem:[#allocation2 + $0x10] sm:$0xff]  }
  0x18   :  { %1766 = vmatpush3.bf16.msra.mxu1 %v1888_v4  ;;  %1655 = vmatprep.subr.bf16.mxu0 %v1889_v5  ;;  %v1896_v12 = vld [vmem:[%s2263_s1 + $0x10] sm:$0xff]   ;;  %v1897_v13 = vld [vmem:[#allocation2 + $0x58] sm:$0xff]   ;;  %v1901_v17 = vld [vmem:[#allocation2 + $0x60] sm:$0xff]  }
  0x19   :  { %1767 = vmatprep.subr.bf16.mxu1 %v1890_v6  ;;  %v1898_v14 = vld [vmem:[%s2263_s1 + $0x58] sm:$0xff]   ;;  %v1902_v18 = vld [vmem:[%s2263_s1 + $0x60] sm:$0xff]   ;;  %v1905_v21 = vld [vmem:[#allocation2 + $0x68] sm:$0xff]  }
  0x1a   :  { %v1899_v15 = vld [vmem:[#allocation2 + $0x18] sm:$0xff]   ;;  %v1903_v19 = vld [vmem:[#allocation2 + $0x20] sm:$0xff]   ;;  %v1906_v22 = vld [vmem:[%s2263_s1 + $0x68] sm:$0xff]  }
  0x1b   :  { %1656 = vmatpush3.bf16.msra.mxu0 %v1891_v7  ;;  %v1900_v16 = vld [vmem:[%s2263_s1 + $0x18] sm:$0xff]   ;;  %v1904_v20 = vld [vmem:[%s2263_s1 + $0x20] sm:$0xff]   ;;  %v1907_v23 = vld [vmem:[#allocation2 + $0x28] sm:$0xff]  }
  0x1c   :  { %1768 = vmatpush3.bf16.msra.mxu1 %v1892_v8  ;;  %1657 = vmatprep.subr.bf16.mxu0 %v1893_v9  ;;  %v1908_v24 = vld [vmem:[%s2263_s1 + $0x28] sm:$0xff]   ;;  %v1909_v25 = vld [vmem:[#allocation2 + $0x70] sm:$0xff]   ;;  %v1913_v29 = vld [vmem:[#allocation2 + $0x78] sm:$0xff]  }
  0x1d   :  { %1769 = vmatprep.subr.bf16.mxu1 %v1894_v10  ;;  %v1910_v26 = vld [vmem:[%s2263_s1 + $0x70] sm:$0xff]   ;;  %v1914_v30 = vld [vmem:[%s2263_s1 + $0x78] sm:$0xff]   ;;  %v37_v33 = vld [vmem:[%s2262_s0 + $0x8] sm:$0xff] }
  0x1e   :  { %v1911_v27 = vld [vmem:[#allocation2 + $0x30] sm:$0xff]   ;;  %v1915_v31 = vld [vmem:[#allocation2 + $0x38] sm:$0xff]   ;;  %v36_v34 = vld [vmem:[%s2262_s0] sm:$0xff]  ;;  %v53_v35 = vunpack.c.l.s8.bf16 %v37_v33  ;;  %v55_v36 = vunpack.c.h.s8.bf16 %v37_v33 }
  0x1f   :  { %1658 = vmatpush3.bf16.msra.mxu0 %v1895_v11  ;;  %v1912_v28 = vld [vmem:[%s2263_s1 + $0x30] sm:$0xff]   ;;  %v1916_v32 = vld [vmem:[%s2263_s1 + $0x38] sm:$0xff]   ;;  %v52_v37 = vunpack.c.l.s8.bf16 %v36_v34  ;;  %v662_v38 = vld [vmem:[%s2265_s3] sm:$0xff]  ;;  %v54_v43 = vunpack.c.h.s8.bf16 %v36_v34 }
  0x20   :  { %1770 = vmatpush3.bf16.msra.mxu1 %v1896_v12  ;;  %1659 = vmatprep.subr.bf16.mxu0 %v1897_v13  ;;  %v664_v39 = vld [vmem:[%s2265_s3 + $0x10] sm:$0xff]  ;;  %v39_v40 = vld [vmem:[%s2262_s0 + $0x18] sm:$0xff]  ;;  %v663_v41 = vld [vmem:[%s2265_s3 + $0x8] sm:$0xff] }
  0x21   :  { %1771 = vmatprep.subr.bf16.mxu1 %v1898_v14  ;;  %276 = vmatprep.mubr.bf16.mxu0 %v53_v35  ;;  %v665_v42 = vld [vmem:[%s2265_s3 + $0x18] sm:$0xff]  ;;  %v57_v44 = vunpack.c.l.s8.bf16 %v39_v40  ;;  %v667_v45 = vld [vmem:[%s2265_s3 + $0x28] sm:$0xff]  ;;  %v666_v46 = vld [vmem:[%s2265_s3 + $0x20] sm:$0xff]  ;;  %v59_v51 = vunpack.c.h.s8.bf16 %v39_v40 }
  0x22   :  { %533 = vmatprep.mubr.bf16.mxu1 %v53_v35  ;;  %696 = vperm.xlu0 %1883, %v662_v38   ;;  %v38_v47 = vld [vmem:[%s2262_s0 + $0x10] sm:$0xff]  ;;  %v669_v48 = vld [vmem:[%s2265_s3 + $0x38] sm:$0xff]  ;;  %v671_v52 = vld [vmem:[%s2265_s3 + $0x48] sm:$0xff] }
  0x23   :  { %1660 = vmatpush3.bf16.msra.mxu0 %v1899_v15  ;;  %706 = vperm.xlu1 %1884, %v664_v39   ;;  %v668_v49 = vld [vmem:[%s2265_s3 + $0x30] sm:$0xff]  ;;  %v56_v50 = vunpack.c.l.s8.bf16 %v38_v47  ;;  %v670_v53 = vld [vmem:[%s2265_s3 + $0x40] sm:$0xff]  ;;  %v41_v54 = vld [vmem:[%s2262_s0 + $0x28] sm:$0xff]  ;;  %v58_v57 = vunpack.c.h.s8.bf16 %v38_v47 }
  0x24   :  { %1772 = vmatpush3.bf16.msra.mxu1 %v1900_v16  ;;  %1661 = vmatprep.subr.bf16.mxu0 %v1901_v17  ;;  %v673_v55 = vld [vmem:[%s2265_s3 + $0x58] sm:$0xff]  ;;  %v672_v56 = vld [vmem:[%s2265_s3 + $0x50] sm:$0xff]  ;;  %v61_v58 = vunpack.c.l.s8.bf16 %v41_v54  ;;  %v675_v59 = vld [vmem:[%s2265_s3 + $0x68] sm:$0xff]  ;;  %v63_v1 = vunpack.c.h.s8.bf16 %v41_v54 }
  0x25   :  { %1773 = vmatprep.subr.bf16.mxu1 %v1902_v18  ;;  %v674_v60 = vld [vmem:[%s2265_s3 + $0x60] sm:$0xff]  ;;  %v677_v62 = vld [vmem:[%s2265_s3 + $0x78] sm:$0xff]  ;;  %v676_v63 = vld [vmem:[%s2265_s3 + $0x70] sm:$0xff] }
  0x26   :  { %701 = vperm.xlu0 %1883, %v663_v41   ;;  %v40_v61 = vld [vmem:[%s2262_s0 + $0x20] sm:$0xff]  ;;  %v679_v2 = vld [vmem:[%s2265_s3 + $0x88] sm:$0xff]  ;;  %v43_v4 = vld [vmem:[%s2262_s0 + $0x38] sm:$0xff] }
  0x27   :  { %1662 = vmatpush3.bf16.msra.mxu0 %v1903_v19  ;;  %711 = vperm.xlu1 %1884, %v665_v42   ;;  %v60_v0 = vunpack.c.l.s8.bf16 %v40_v61  ;;  %v678_v3 = vld [vmem:[%s2265_s3 + $0x80] sm:$0xff]  ;;  %v681_v5 = vld [vmem:[%s2265_s3 + $0x98] sm:$0xff]  ;;  %v680_v6 = vld [vmem:[%s2265_s3 + $0x90] sm:$0xff]  ;;  %v62_v7 = vunpack.c.h.s8.bf16 %v40_v61  ;;  %v65_v8 = vunpack.c.l.s8.bf16 %v43_v4  ;;  %v67_v15 = vunpack.c.h.s8.bf16 %v43_v4 }
  0x28   :  { %1774 = vmatpush3.bf16.msra.mxu1 %v1904_v20  ;;  %1663 = vmatprep.subr.bf16.mxu0 %v1905_v21  ;;  %v683_v9 = vld [vmem:[%s2265_s3 + $0xa8] sm:$0xff]  ;;  %v682_v10 = vld [vmem:[%s2265_s3 + $0xa0] sm:$0xff]  ;;  %v42_v11 = vld [vmem:[%s2262_s0 + $0x30] sm:$0xff] }
  0x29   :  { %1775 = vmatprep.subr.bf16.mxu1 %v1906_v22  ;;  %v685_v12 = vld [vmem:[%s2265_s3 + $0xb8] sm:$0xff]  ;;  %v684_v13 = vld [vmem:[%s2265_s3 + $0xb0] sm:$0xff]  ;;  %v64_v14 = vunpack.c.l.s8.bf16 %v42_v11  ;;  %v687_v16 = vld [vmem:[%s2265_s3 + $0xc8] sm:$0xff]  ;;  %v66_v21 = vunpack.c.h.s8.bf16 %v42_v11 }
  0x2a   :  { %716 = vperm.xlu0 %1883, %v666_v46   ;;  %v686_v17 = vld [vmem:[%s2265_s3 + $0xc0] sm:$0xff]  ;;  %v45_v18 = vld [vmem:[%s2262_s0 + $0x48] sm:$0xff]  ;;  %v689_v19 = vld [vmem:[%s2265_s3 + $0xd8] sm:$0xff] }
  0x2b   :  { %1664 = vmatpush3.bf16.msra.mxu0 %v1907_v23  ;;  %721 = vperm.xlu1 %1884, %v667_v45   ;;  %v688_v20 = vld [vmem:[%s2265_s3 + $0xd0] sm:$0xff]  ;;  %v69_v22 = vunpack.c.l.s8.bf16 %v45_v18  ;;  %v691_v23 = vld [vmem:[%s2265_s3 + $0xe8] sm:$0xff]  ;;  %v48_v39 = vld [vmem:[%s2262_s0 + $0x60] sm:$0xff] }
  0x2c   :  { %1776 = vmatpush3.bf16.msra.mxu1 %v1908_v24  ;;  %1665 = vmatprep.subr.bf16.mxu0 %v1909_v25  ;;  %v690_v24 = vld [vmem:[%s2265_s3 + $0xe0] sm:$0xff]  ;;  %v46_v33 = vld [vmem:[%s2262_s0 + $0x50] sm:$0xff]  ;;  %v76_v40 = vunpack.c.l.s8.bf16 %v48_v39  ;;  %v51_v42 = vld [vmem:[%s2262_s0 + $0x78] sm:$0xff] }
  0x2d   :  { %1777 = vmatprep.subr.bf16.mxu1 %v1910_v26  ;;  %v44_v25 = vld [vmem:[%s2262_s0 + $0x40] sm:$0xff]  ;;  %v693_v26 = vld [vmem:[%s2265_s3 + $0xf8] sm:$0xff]  ;;  %v72_v34 = vunpack.c.l.s8.bf16 %v46_v33  ;;  %v50_v45 = vld [vmem:[%s2262_s0 + $0x70] sm:$0xff]  ;;  %v83_v47 = vunpack.c.h.s8.bf16 %v51_v42 }
  0x2e   :  { %726 = vperm.xlu0 %1883, %v668_v49   ;;  %v80_v46 = vunpack.c.l.s8.bf16 %v50_v45 }
  0x2f   :  { %1666 = vmatpush3.bf16.msra.mxu0 %v1911_v27  ;;  %731 = vperm.xlu1 %1884, %v669_v48   ;;  %v692_v27 = vld [vmem:[%s2265_s3 + $0xf0] sm:$0xff]  ;;  %v82_v48 = vunpack.c.h.s8.bf16 %v50_v45 }
  0x30   :  { %1778 = vmatpush3.bf16.msra.mxu1 %v1912_v28  ;;  %1667 = vmatprep.subr.bf16.mxu0 %v1913_v29  ;;  %v68_v28 = vunpack.c.l.s8.bf16 %v44_v25  ;;  %v71_v29 = vunpack.c.h.s8.bf16 %v45_v18 }
  0x31   :  { %1779 = vmatprep.subr.bf16.mxu1 %v1914_v30  ;;  %v47_v30 = vld [vmem:[%s2262_s0 + $0x58] sm:$0xff] }
  0x32   :  { %736 = vperm.xlu0 %1883, %v670_v53   ;;  %v75_v35 = vunpack.c.h.s8.bf16 %v47_v30 }
  0x33   :  { %1668 = vmatpush3.bf16.msra.mxu0 %v1915_v31  ;;  %741 = vperm.xlu1 %1884, %v671_v52   ;;  %v70_v31 = vunpack.c.h.s8.bf16 %v44_v25 }
  0x34   :  { %1780 = vmatpush3.bf16.msra.mxu1 %v1916_v32  ;;  %v73_v32 = vunpack.c.l.s8.bf16 %v47_v30 }
  0x36   :  { %277 = vmatmul.mubr.bf16.vlgmr.msra.gmra.mrb[0].mxu0 %v52_v37  ;;  %746 = vperm.xlu0 %1883, %v672_v56  }
  0x37   :  { %534 = vmatmul.mubr.bf16.vlgmr.msra.gmra.mrb[0].mxu1 %v52_v37  ;;  %284 = vmatprep.mubr.bf16.mxu0 %v55_v36  ;;  %v74_v37 = vunpack.c.h.s8.bf16 %v46_v33 }
  0x38   :  { %541 = vmatprep.mubr.bf16.mxu1 %v55_v36  ;;  %751 = vperm.xlu1 %1884, %v673_v55   ;;  %v49_v36 = vld [vmem:[%s2262_s0 + $0x68] sm:$0xff]  ;;  %s1993_s0 = smov [#allocation5]  }
  0x39   :  { %v77_v38 = vunpack.c.l.s8.bf16 %v49_v36  ;;  %v79_v41 = vunpack.c.h.s8.bf16 %v49_v36  ;;  %s1275_s10 = sshll.u32 %s1993_s0, 4  ;;  %s1276_s10 = int_to_ptr.vmem [resolvable:$true] %s1275_s10 }
  0x3a   :  { %756 = vperm.xlu0 %1883, %v674_v60   ;;  %s1939_s12 = scalar_lea.vmem %s1276_s10, 2048  ;;  %p1944_p9 = scmp.lt.s32.totalorder %s1276_s10, %s1276_s10 }
  0x3b   :  { %p1940_p8 = scmp.ne.s32.totalorder %s1276_s10, %s1939_s12  ;;  %p1945_p10 = scmp.lt.s32.totalorder %s1939_s12, %s1939_s12 }
  0x3c   :  { %761 = vperm.xlu1 %1884, %v675_v59  }
  0x3d   :  { %p1946_p11 = por %p1945_p10, %p1944_p9 }
  0x3e   :  { %285 = vmatmul.mubr.bf16.gmra.mrb[4].mxu0 %v54_v43  ;;  %766 = vperm.xlu0 %1883, %v676_v63  }
  0x3f   :  { %542 = vmatmul.mubr.bf16.gmra.mrb[4].mxu1 %v54_v43  ;;  %292 = vmatprep.mubr.bf16.mxu0 %v57_v44  ;;  %v78_v43 = vunpack.c.h.s8.bf16 %v48_v39  ;;  %p1947_p12 = pnand %p1946_p11, %p1940_p8 }
  0x40   :  { %549 = vmatprep.mubr.bf16.mxu1 %v57_v44  ;;  %771 = vperm.xlu1 %1884, %v677_v62   ;;  %v81_v44 = vunpack.c.l.s8.bf16 %v51_v42 }
  0x42   :  { %776 = vperm.xlu0 %1883, %v678_v3  }
  0x44   :  { %781 = vperm.xlu1 %1884, %v679_v2  }
  0x46   :  { %293 = vmatmul.mubr.bf16.gmra.mrb[8].mxu0 %v56_v50  ;;  %786 = vperm.xlu0 %1883, %v680_v6  }
  0x47   :  { %550 = vmatmul.mubr.bf16.gmra.mrb[8].mxu1 %v56_v50  ;;  %300 = vmatprep.mubr.bf16.mxu0 %v59_v51 }
  0x48   :  { %557 = vmatprep.mubr.bf16.mxu1 %v59_v51  ;;  %791 = vperm.xlu1 %1884, %v681_v5  }
  0x4a   :  { %796 = vperm.xlu0 %1883, %v682_v10  }
  0x4c   :  { %801 = vperm.xlu1 %1884, %v683_v9  }
  0x4e   :  { %301 = vmatmul.mubr.bf16.gmra.mrb[12].mxu0 %v58_v57  ;;  %806 = vperm.xlu0 %1883, %v684_v13  }
  0x4f   :  { %558 = vmatmul.mubr.bf16.gmra.mrb[12].mxu1 %v58_v57  ;;  %308 = vmatprep.mubr.bf16.mxu0 %v61_v58 }
  0x50   :  { %565 = vmatprep.mubr.bf16.mxu1 %v61_v58  ;;  %811 = vperm.xlu1 %1884, %v685_v12  }
  0x52   :  { %816 = vperm.xlu0 %1883, %v686_v17  }
  0x54   :  { %821 = vperm.xlu1 %1884, %v687_v16  }
  0x56   :  { %309 = vmatmul.mubr.bf16.gmra.mrb[16].mxu0 %v60_v0  ;;  %826 = vperm.xlu0 %1883, %v688_v20  }
  0x57   :  { %566 = vmatmul.mubr.bf16.gmra.mrb[16].mxu1 %v60_v0  ;;  %316 = vmatprep.mubr.bf16.mxu0 %v63_v1 }
  0x58   :  { %573 = vmatprep.mubr.bf16.mxu1 %v63_v1  ;;  %831 = vperm.xlu1 %1884, %v689_v19  }
  0x5a   :  { %836 = vperm.xlu0 %1883, %v690_v24  }
  0x5c   :  { %841 = vperm.xlu1 %1884, %v691_v23  }
  0x5e   :  { %317 = vmatmul.mubr.bf16.gmra.mrb[20].mxu0 %v62_v7  ;;  %846 = vperm.xlu0 %1883, %v692_v27  }
  0x5f   :  { %574 = vmatmul.mubr.bf16.gmra.mrb[20].mxu1 %v62_v7  ;;  %324 = vmatprep.mubr.bf16.mxu0 %v65_v8 }
  0x60   :  { %581 = vmatprep.mubr.bf16.mxu1 %v65_v8  ;;  %851 = vperm.xlu1 %1884, %v693_v26  }
  0x66   :  { %325 = vmatmul.mubr.bf16.gmra.mrb[24].mxu0 %v64_v14 }
  0x67   :  { %582 = vmatmul.mubr.bf16.gmra.mrb[24].mxu1 %v64_v14  ;;  %332 = vmatprep.mubr.bf16.mxu0 %v67_v15 }
  0x68   :  { %589 = vmatprep.mubr.bf16.mxu1 %v67_v15 }
  0x6e   :  { %333 = vmatmul.mubr.bf16.gmra.mrb[28].mxu0 %v66_v21 }
  0x6f   :  { %590 = vmatmul.mubr.bf16.gmra.mrb[28].mxu1 %v66_v21  ;;  %340 = vmatprep.mubr.bf16.mxu0 %v69_v22 }
  0x70   :  { %597 = vmatprep.mubr.bf16.mxu1 %v69_v22 }
  0x76   :  { %341 = vmatmul.mubr.bf16.gmra.mrb[32].mxu0 %v68_v28 }
  0x77   :  { %598 = vmatmul.mubr.bf16.gmra.mrb[32].mxu1 %v68_v28  ;;  %348 = vmatprep.mubr.bf16.mxu0 %v71_v29 }
  0x78   :  { %605 = vmatprep.mubr.bf16.mxu1 %v71_v29 }
  0x7e   :  { %349 = vmatmul.mubr.bf16.gmra.mrb[36].mxu0 %v70_v31 }
  0x7f   :  { %606 = vmatmul.mubr.bf16.gmra.mrb[36].mxu1 %v70_v31  ;;  %356 = vmatprep.mubr.bf16.mxu0 %v73_v32 }
  0x80   :  { %613 = vmatprep.mubr.bf16.mxu1 %v73_v32 }
  0x86   :  { %357 = vmatmul.mubr.bf16.gmra.mrb[40].mxu0 %v72_v34 }
  0x87   :  { %614 = vmatmul.mubr.bf16.gmra.mrb[40].mxu1 %v72_v34  ;;  %364 = vmatprep.mubr.bf16.mxu0 %v75_v35 }
  0x88   :  { %621 = vmatprep.mubr.bf16.mxu1 %v75_v35 }
  0x8e   :  { %365 = vmatmul.mubr.bf16.gmra.mrb[44].mxu0 %v74_v37 }
  0x8f   :  { %622 = vmatmul.mubr.bf16.gmra.mrb[44].mxu1 %v74_v37  ;;  %372 = vmatprep.mubr.bf16.mxu0 %v77_v38 }
  0x90   :  { %629 = vmatprep.mubr.bf16.mxu1 %v77_v38 }
  0x96   :  { %373 = vmatmul.mubr.bf16.gmra.mrb[48].mxu0 %v76_v40 }
  0x97   :  { %630 = vmatmul.mubr.bf16.gmra.mrb[48].mxu1 %v76_v40  ;;  %380 = vmatprep.mubr.bf16.mxu0 %v79_v41 }
  0x98   :  { %637 = vmatprep.mubr.bf16.mxu1 %v79_v41 }
  0x9e   :  { %381 = vmatmul.mubr.bf16.gmra.mrb[52].mxu0 %v78_v43 }
  0x9f   :  { %638 = vmatmul.mubr.bf16.gmra.mrb[52].mxu1 %v78_v43  ;;  %388 = vmatprep.mubr.bf16.mxu0 %v81_v44 }
  0xa0   :  { %645 = vmatprep.mubr.bf16.mxu1 %v81_v44 }
  0xa1   :  { %v697_v49 = vpop.permute.xlu0 %696 }
  0xa2   :  { %v707_v1 = vpop.permute.xlu1 %706 }
  0xa5   :  { %v702_v63 = vpop.permute.xlu0 %701 }
  0xa6   :  { %389 = vmatmul.mubr.bf16.gmra.mrb[56].mxu0 %v80_v46  ;;  %v712_v22 = vpop.permute.xlu1 %711 }
  0xa7   :  { %646 = vmatmul.mubr.bf16.gmra.mrb[56].mxu1 %v80_v46  ;;  %396 = vmatprep.mubr.bf16.mxu0 %v83_v47 }
  0xa8   :  { %653 = vmatprep.mubr.bf16.mxu1 %v83_v47 }
  0xa9   :  { %v717_v47 = vpop.permute.xlu0 %716 }
  0xaa   :  { %v722_v46 = vpop.permute.xlu1 %721 }
  0xae   :  { %397 = vmatmul.mubr.bf16.gmra.mrb[60].mxu0 %v82_v48 }
  0xaf   :  { %654 = vmatmul.mubr.bf16.gmra.mrb[60].mxu1 %v82_v48 }
 0x109   :  { %v1669_v50 = vpop.f32.mrb[0].mxu0 }
 0x10a   :  { %v1781_v51 = vpop.f32.mrb[0].mxu1  ;;  %v1670_v52 = vpop.f32.mrb[1].mxu0 }
 0x10b   :  { %v1782_v53 = vpop.f32.mrb[1].mxu1  ;;  %v1671_v54 = vadd.f32 %v1670_v52, %v1669_v50  ;;  %v1672_v56 = vpop.f32.mrb[2].mxu0 }
 0x10c   :  { %v1783_v55 = vadd.f32 %v1782_v53, %v1781_v51  ;;  %v1784_v57 = vpop.f32.mrb[2].mxu1  ;;  %v1673_v58 = vpop.f32.mrb[3].mxu0 }
 0x10d   :  { %v1785_v59 = vpop.f32.mrb[3].mxu1  ;;  %v1674_v61 = vadd.f32 %v1673_v58, %v1672_v56 }
 0x10e   :  { %v536_v60 = vadd.f32 %v1783_v55, %v1671_v54  ;;  %v1786_v62 = vadd.f32 %v1785_v59, %v1784_v57 }
 0x110   :  { %v539_v0 = vadd.f32 %v1786_v62, %v1674_v61  ;;  %v854_v2 = vmul.f32 %v697_v49, %v536_v60 }
 0x111   :  { %v1675_v4 = vpop.f32.mrb[4].mxu0 }
 0x112   :  { %v855_v3 = vmul.f32 %v702_v63, %v539_v0  ;;  %v1787_v5 = vpop.f32.mrb[4].mxu1  ;;  %v1676_v6 = vpop.f32.mrb[5].mxu0 }
 0x113   :  { %v1788_v7 = vpop.f32.mrb[5].mxu1  ;;  %v1677_v9 = vadd.f32 %v1676_v6, %v1675_v4  ;;  %v1678_v11 = vpop.f32.mrb[6].mxu0 }
 0x114   :  { %v886_v8 = vpack.c.bf16 %v855_v3, %v854_v2  ;;  %v1789_v10 = vadd.f32 %v1788_v7, %v1787_v5  ;;  %v1790_v12 = vpop.f32.mrb[6].mxu1  ;;  %v1679_v13 = vpop.f32.mrb[7].mxu0 }
 0x115   :  { %v1791_v14 = vpop.f32.mrb[7].mxu1  ;;  %v1680_v18 = vadd.f32 %v1679_v13, %v1678_v11  ;;  %v732_v5 = vpop.permute.xlu1 %731 }
 0x116   :  { %1467 = vst [vmem:[#allocation5] sm:$0xff] %v886_v8   ;;  %v1046_v15 = vunpack.c.l.bf16 %v886_v8  ;;  %v1047_v16 = vunpack.c.h.bf16 %v886_v8  ;;  %v544_v17 = vadd.f32 %v1789_v10, %v1677_v9  ;;  %v1792_v19 = vadd.f32 %v1791_v14, %v1790_v12  ;;  %v727_v6 = vpop.permute.xlu0 %726 }
 0x118   :  { %v1078_v20 = vsub.f32 %v854_v2, %v1046_v15  ;;  %v1079_v21 = vsub.f32 %v855_v3, %v1047_v16  ;;  %v547_v23 = vadd.f32 %v1792_v19, %v1680_v18  ;;  %v856_v27 = vmul.f32 %v707_v1, %v544_v17 }
 0x119   :  { %v1681_v25 = vpop.f32.mrb[8].mxu0 }
 0x11a   :  { %v1546_v24 = vpack.c.bf16 %v1079_v21, %v1078_v20  ;;  %v1793_v26 = vpop.f32.mrb[8].mxu1  ;;  %v857_v28 = vmul.f32 %v712_v22, %v547_v23  ;;  %v1682_v29 = vpop.f32.mrb[9].mxu0 }
 0x11b   :  { %v1794_v30 = vpop.f32.mrb[9].mxu1  ;;  %v1683_v31 = vadd.f32 %v1682_v29, %v1681_v25  ;;  %v1684_v33 = vpop.f32.mrb[10].mxu0 }
 0x11c   :  { %1547 = vst [vmem:[#allocation6] sm:$0xff] %v1546_v24   ;;  %v1795_v32 = vadd.f32 %v1794_v30, %v1793_v26  ;;  %v1796_v34 = vpop.f32.mrb[10].mxu1  ;;  %v887_v35 = vpack.c.bf16 %v857_v28, %v856_v27  ;;  %v1685_v36 = vpop.f32.mrb[11].mxu0 }
 0x11d   :  { %v1797_v37 = vpop.f32.mrb[11].mxu1  ;;  %v1686_v39 = vadd.f32 %v1685_v36, %v1684_v33  ;;  %v737_v29 = vpop.permute.xlu0 %736 }
 0x11e   :  { %v552_v38 = vadd.f32 %v1795_v32, %v1683_v31  ;;  %v1798_v40 = vadd.f32 %v1797_v37, %v1796_v34  ;;  %1623 = vst [vmem:[#allocation5 + $0x8] sm:$0xff] %v887_v35   ;;  %v1048_v41 = vunpack.c.l.bf16 %v887_v35  ;;  %v1049_v42 = vunpack.c.h.bf16 %v887_v35 }
 0x120   :  { %v555_v43 = vadd.f32 %v1798_v40, %v1686_v39  ;;  %v1080_v44 = vsub.f32 %v856_v27, %v1048_v41  ;;  %v1081_v45 = vsub.f32 %v857_v28, %v1049_v42  ;;  %v858_v48 = vmul.f32 %v717_v47, %v552_v38  ;;  %v742_v28 = vpop.permute.xlu1 %741 }
 0x121   :  { %v1687_v50 = vpop.f32.mrb[12].mxu0 }
 0x122   :  { %v859_v49 = vmul.f32 %v722_v46, %v555_v43  ;;  %v1799_v51 = vpop.f32.mrb[12].mxu1  ;;  %v1551_v52 = vpack.c.bf16 %v1081_v45, %v1080_v44  ;;  %v1688_v53 = vpop.f32.mrb[13].mxu0 }
 0x123   :  { %v1800_v54 = vpop.f32.mrb[13].mxu1  ;;  %v1689_v56 = vadd.f32 %v1688_v53, %v1687_v50  ;;  %v1690_v58 = vpop.f32.mrb[14].mxu0 }
 0x124   :  { %v888_v55 = vpack.c.bf16 %v859_v49, %v858_v48  ;;  %v1801_v57 = vadd.f32 %v1800_v54, %v1799_v51  ;;  %v1802_v59 = vpop.f32.mrb[14].mxu1  ;;  %1638 = vst [vmem:[#allocation6 + $0x8] sm:$0xff] %v1551_v52   ;;  %v1691_v60 = vpop.f32.mrb[15].mxu0 }
 0x125   :  { %v1803_v61 = vpop.f32.mrb[15].mxu1  ;;  %v1692_v1 = vadd.f32 %v1691_v60, %v1690_v58  ;;  %v752_v53 = vpop.permute.xlu1 %751 }
 0x126   :  { %1624 = vst [vmem:[#allocation5 + $0x10] sm:$0xff] %v888_v55   ;;  %v1050_v62 = vunpack.c.l.bf16 %v888_v55  ;;  %v1051_v63 = vunpack.c.h.bf16 %v888_v55  ;;  %v560_v0 = vadd.f32 %v1801_v57, %v1689_v56  ;;  %v1804_v2 = vadd.f32 %v1803_v61, %v1802_v59  ;;  %v747_v54 = vpop.permute.xlu0 %746 }
 0x128   :  { %v1082_v3 = vsub.f32 %v858_v48, %v1050_v62  ;;  %v1083_v4 = vsub.f32 %v859_v49, %v1051_v63  ;;  %v563_v7 = vadd.f32 %v1804_v2, %v1692_v1  ;;  %v860_v11 = vmul.f32 %v727_v6, %v560_v0 }
 0x129   :  { %v1693_v9 = vpop.f32.mrb[16].mxu0 }
 0x12a   :  { %v1556_v8 = vpack.c.bf16 %v1083_v4, %v1082_v3  ;;  %v1805_v10 = vpop.f32.mrb[16].mxu1  ;;  %v861_v12 = vmul.f32 %v732_v5, %v563_v7  ;;  %v1694_v13 = vpop.f32.mrb[17].mxu0 }
 0x12b   :  { %v1806_v14 = vpop.f32.mrb[17].mxu1  ;;  %v1695_v15 = vadd.f32 %v1694_v13, %v1693_v9  ;;  %v1696_v17 = vpop.f32.mrb[18].mxu0 }
 0x12c   :  { %1639 = vst [vmem:[#allocation6 + $0x10] sm:$0xff] %v1556_v8   ;;  %v1807_v16 = vadd.f32 %v1806_v14, %v1805_v10  ;;  %v1808_v18 = vpop.f32.mrb[18].mxu1  ;;  %v889_v19 = vpack.c.bf16 %v861_v12, %v860_v11  ;;  %v1697_v20 = vpop.f32.mrb[19].mxu0 }
 0x12d   :  { %v1809_v21 = vpop.f32.mrb[19].mxu1  ;;  %v1698_v23 = vadd.f32 %v1697_v20, %v1696_v17  ;;  %v757_v13 = vpop.permute.xlu0 %756 }
 0x12e   :  { %v568_v22 = vadd.f32 %v1807_v16, %v1695_v15  ;;  %v1810_v24 = vadd.f32 %v1809_v21, %v1808_v18  ;;  %1625 = vst [vmem:[#allocation5 + $0x18] sm:$0xff] %v889_v19   ;;  %v1052_v25 = vunpack.c.l.bf16 %v889_v19  ;;  %v1053_v26 = vunpack.c.h.bf16 %v889_v19 }
 0x130   :  { %v571_v27 = vadd.f32 %v1810_v24, %v1698_v23  ;;  %v1084_v30 = vsub.f32 %v860_v11, %v1052_v25  ;;  %v1085_v31 = vsub.f32 %v861_v12, %v1053_v26  ;;  %v862_v32 = vmul.f32 %v737_v29, %v568_v22  ;;  %v762_v12 = vpop.permute.xlu1 %761 }
 0x131   :  { %v1699_v34 = vpop.f32.mrb[20].mxu0 }
 0x132   :  { %v863_v33 = vmul.f32 %v742_v28, %v571_v27  ;;  %v1811_v35 = vpop.f32.mrb[20].mxu1  ;;  %v1561_v36 = vpack.c.bf16 %v1085_v31, %v1084_v30  ;;  %v1700_v37 = vpop.f32.mrb[21].mxu0 }
 0x133   :  { %v1812_v38 = vpop.f32.mrb[21].mxu1  ;;  %v1701_v40 = vadd.f32 %v1700_v37, %v1699_v34  ;;  %v1702_v42 = vpop.f32.mrb[22].mxu0 }
 0x134   :  { %v890_v39 = vpack.c.bf16 %v863_v33, %v862_v32  ;;  %v1813_v41 = vadd.f32 %v1812_v38, %v1811_v35  ;;  %v1814_v43 = vpop.f32.mrb[22].mxu1  ;;  %1640 = vst [vmem:[#allocation6 + $0x18] sm:$0xff] %v1561_v36   ;;  %v1703_v44 = vpop.f32.mrb[23].mxu0 }
 0x135   :  { %v1815_v45 = vpop.f32.mrb[23].mxu1  ;;  %v1704_v49 = vadd.f32 %v1703_v44, %v1702_v42  ;;  %v772_v37 = vpop.permute.xlu1 %771 }
 0x136   :  { %1626 = vst [vmem:[#allocation5 + $0x20] sm:$0xff] %v890_v39   ;;  %v1054_v46 = vunpack.c.l.bf16 %v890_v39  ;;  %v1055_v47 = vunpack.c.h.bf16 %v890_v39  ;;  %v576_v48 = vadd.f32 %v1813_v41, %v1701_v40  ;;  %v1816_v50 = vadd.f32 %v1815_v45, %v1814_v43  ;;  %v767_v38 = vpop.permute.xlu0 %766 }
 0x138   :  { %v1086_v51 = vsub.f32 %v862_v32, %v1054_v46  ;;  %v1087_v52 = vsub.f32 %v863_v33, %v1055_v47  ;;  %v579_v55 = vadd.f32 %v1816_v50, %v1704_v49  ;;  %v864_v59 = vmul.f32 %v747_v54, %v576_v48 }
 0x139   :  { %v1705_v57 = vpop.f32.mrb[24].mxu0 }
 0x13a   :  { %v1566_v56 = vpack.c.bf16 %v1087_v52, %v1086_v51  ;;  %v1817_v58 = vpop.f32.mrb[24].mxu1  ;;  %v865_v60 = vmul.f32 %v752_v53, %v579_v55  ;;  %v1706_v61 = vpop.f32.mrb[25].mxu0 }
 0x13b   :  { %v1818_v62 = vpop.f32.mrb[25].mxu1  ;;  %v1707_v63 = vadd.f32 %v1706_v61, %v1705_v57  ;;  %v1708_v1 = vpop.f32.mrb[26].mxu0 }
 0x13c   :  { %1641 = vst [vmem:[#allocation6 + $0x20] sm:$0xff] %v1566_v56   ;;  %v1819_v0 = vadd.f32 %v1818_v62, %v1817_v58  ;;  %v1820_v2 = vpop.f32.mrb[26].mxu1  ;;  %v891_v3 = vpack.c.bf16 %v865_v60, %v864_v59  ;;  %v1709_v4 = vpop.f32.mrb[27].mxu0 }
 0x13d   :  { %v1821_v5 = vpop.f32.mrb[27].mxu1  ;;  %v1710_v7 = vadd.f32 %v1709_v4, %v1708_v1  ;;  %v777_v61 = vpop.permute.xlu0 %776 }
 0x13e   :  { %v584_v6 = vadd.f32 %v1819_v0, %v1707_v63  ;;  %v1822_v8 = vadd.f32 %v1821_v5, %v1820_v2  ;;  %1627 = vst [vmem:[#allocation5 + $0x28] sm:$0xff] %v891_v3   ;;  %v1056_v9 = vunpack.c.l.bf16 %v891_v3  ;;  %v1057_v10 = vunpack.c.h.bf16 %v891_v3 }
 0x140   :  { %v587_v11 = vadd.f32 %v1822_v8, %v1710_v7  ;;  %v1088_v14 = vsub.f32 %v864_v59, %v1056_v9  ;;  %v1089_v15 = vsub.f32 %v865_v60, %v1057_v10  ;;  %v866_v16 = vmul.f32 %v757_v13, %v584_v6  ;;  %v782_v60 = vpop.permute.xlu1 %781 }
 0x141   :  { %v1711_v18 = vpop.f32.mrb[28].mxu0 }
 0x142   :  { %v867_v17 = vmul.f32 %v762_v12, %v587_v11  ;;  %v1823_v19 = vpop.f32.mrb[28].mxu1  ;;  %v1571_v20 = vpack.c.bf16 %v1089_v15, %v1088_v14  ;;  %v1712_v21 = vpop.f32.mrb[29].mxu0 }
 0x143   :  { %v1824_v22 = vpop.f32.mrb[29].mxu1  ;;  %v1713_v24 = vadd.f32 %v1712_v21, %v1711_v18  ;;  %v1714_v26 = vpop.f32.mrb[30].mxu0 }
 0x144   :  { %v892_v23 = vpack.c.bf16 %v867_v17, %v866_v16  ;;  %v1825_v25 = vadd.f32 %v1824_v22, %v1823_v19  ;;  %v1826_v27 = vpop.f32.mrb[30].mxu1  ;;  %1642 = vst [vmem:[#allocation6 + $0x28] sm:$0xff] %v1571_v20   ;;  %v1715_v28 = vpop.f32.mrb[31].mxu0 }
 0x145   :  { %v1827_v29 = vpop.f32.mrb[31].mxu1  ;;  %v1716_v33 = vadd.f32 %v1715_v28, %v1714_v26  ;;  %v792_v21 = vpop.permute.xlu1 %791 }
 0x146   :  { %1628 = vst [vmem:[#allocation5 + $0x30] sm:$0xff] %v892_v23   ;;  %v1058_v30 = vunpack.c.l.bf16 %v892_v23  ;;  %v1059_v31 = vunpack.c.h.bf16 %v892_v23  ;;  %v592_v32 = vadd.f32 %v1825_v25, %v1713_v24  ;;  %v1828_v34 = vadd.f32 %v1827_v29, %v1826_v27  ;;  %v787_v22 = vpop.permute.xlu0 %786 }
 0x148   :  { %v1090_v35 = vsub.f32 %v866_v16, %v1058_v30  ;;  %v1091_v36 = vsub.f32 %v867_v17, %v1059_v31  ;;  %v595_v39 = vadd.f32 %v1828_v34, %v1716_v33  ;;  %v868_v43 = vmul.f32 %v767_v38, %v592_v32 }
 0x149   :  { %v1717_v41 = vpop.f32.mrb[32].mxu0 }
 0x14a   :  { %v1576_v40 = vpack.c.bf16 %v1091_v36, %v1090_v35  ;;  %v1829_v42 = vpop.f32.mrb[32].mxu1  ;;  %v869_v44 = vmul.f32 %v772_v37, %v595_v39  ;;  %v1718_v45 = vpop.f32.mrb[33].mxu0 }
 0x14b   :  { %v1830_v46 = vpop.f32.mrb[33].mxu1  ;;  %v1719_v47 = vadd.f32 %v1718_v45, %v1717_v41  ;;  %v1720_v49 = vpop.f32.mrb[34].mxu0 }
 0x14c   :  { %1643 = vst [vmem:[#allocation6 + $0x30] sm:$0xff] %v1576_v40   ;;  %v1831_v48 = vadd.f32 %v1830_v46, %v1829_v42  ;;  %v1832_v50 = vpop.f32.mrb[34].mxu1  ;;  %v893_v51 = vpack.c.bf16 %v869_v44, %v868_v43  ;;  %v1721_v52 = vpop.f32.mrb[35].mxu0 }
 0x14d   :  { %v1833_v53 = vpop.f32.mrb[35].mxu1  ;;  %v1722_v55 = vadd.f32 %v1721_v52, %v1720_v49  ;;  %v797_v45 = vpop.permute.xlu0 %796 }
 0x14e   :  { %v600_v54 = vadd.f32 %v1831_v48, %v1719_v47  ;;  %v1834_v56 = vadd.f32 %v1833_v53, %v1832_v50  ;;  %1629 = vst [vmem:[#allocation5 + $0x38] sm:$0xff] %v893_v51   ;;  %v1060_v57 = vunpack.c.l.bf16 %v893_v51  ;;  %v1061_v58 = vunpack.c.h.bf16 %v893_v51 }
 0x150   :  { %v603_v59 = vadd.f32 %v1834_v56, %v1722_v55  ;;  %v1092_v62 = vsub.f32 %v868_v43, %v1060_v57  ;;  %v1093_v63 = vsub.f32 %v869_v44, %v1061_v58  ;;  %v870_v0 = vmul.f32 %v777_v61, %v600_v54  ;;  %v802_v44 = vpop.permute.xlu1 %801 }
 0x151   :  { %v1723_v2 = vpop.f32.mrb[36].mxu0 }
 0x152   :  { %v871_v1 = vmul.f32 %v782_v60, %v603_v59  ;;  %v1835_v3 = vpop.f32.mrb[36].mxu1  ;;  %v1581_v4 = vpack.c.bf16 %v1093_v63, %v1092_v62  ;;  %v1724_v5 = vpop.f32.mrb[37].mxu0 }
 0x153   :  { %v1836_v6 = vpop.f32.mrb[37].mxu1  ;;  %v1725_v8 = vadd.f32 %v1724_v5, %v1723_v2  ;;  %v1726_v10 = vpop.f32.mrb[38].mxu0 }
 0x154   :  { %v894_v7 = vpack.c.bf16 %v871_v1, %v870_v0  ;;  %v1837_v9 = vadd.f32 %v1836_v6, %v1835_v3  ;;  %v1838_v11 = vpop.f32.mrb[38].mxu1  ;;  %1644 = vst [vmem:[#allocation6 + $0x38] sm:$0xff] %v1581_v4   ;;  %v1727_v12 = vpop.f32.mrb[39].mxu0 }
 0x155   :  { %v1839_v13 = vpop.f32.mrb[39].mxu1  ;;  %v1728_v17 = vadd.f32 %v1727_v12, %v1726_v10  ;;  %v812_v5 = vpop.permute.xlu1 %811 }
 0x156   :  { %1630 = vst [vmem:[#allocation5 + $0x40] sm:$0xff] %v894_v7   ;;  %v1062_v14 = vunpack.c.l.bf16 %v894_v7  ;;  %v1063_v15 = vunpack.c.h.bf16 %v894_v7  ;;  %v608_v16 = vadd.f32 %v1837_v9, %v1725_v8  ;;  %v1840_v18 = vadd.f32 %v1839_v13, %v1838_v11  ;;  %v807_v6 = vpop.permute.xlu0 %806 }
 0x158   :  { %v1094_v19 = vsub.f32 %v870_v0, %v1062_v14  ;;  %v1095_v20 = vsub.f32 %v871_v1, %v1063_v15  ;;  %v611_v23 = vadd.f32 %v1840_v18, %v1728_v17  ;;  %v872_v27 = vmul.f32 %v787_v22, %v608_v16 }
 0x159   :  { %v1729_v25 = vpop.f32.mrb[40].mxu0 }
 0x15a   :  { %v1586_v24 = vpack.c.bf16 %v1095_v20, %v1094_v19  ;;  %v1841_v26 = vpop.f32.mrb[40].mxu1  ;;  %v873_v28 = vmul.f32 %v792_v21, %v611_v23  ;;  %v1730_v29 = vpop.f32.mrb[41].mxu0 }
 0x15b   :  { %v1842_v30 = vpop.f32.mrb[41].mxu1  ;;  %v1731_v31 = vadd.f32 %v1730_v29, %v1729_v25  ;;  %v1732_v33 = vpop.f32.mrb[42].mxu0 }
 0x15c   :  { %1645 = vst [vmem:[#allocation6 + $0x40] sm:$0xff] %v1586_v24   ;;  %v1843_v32 = vadd.f32 %v1842_v30, %v1841_v26  ;;  %v1844_v34 = vpop.f32.mrb[42].mxu1  ;;  %v895_v35 = vpack.c.bf16 %v873_v28, %v872_v27  ;;  %v1733_v36 = vpop.f32.mrb[43].mxu0 }
 0x15d   :  { %v1845_v37 = vpop.f32.mrb[43].mxu1  ;;  %v1734_v39 = vadd.f32 %v1733_v36, %v1732_v33  ;;  %v817_v29 = vpop.permute.xlu0 %816 }
 0x15e   :  { %v616_v38 = vadd.f32 %v1843_v32, %v1731_v31  ;;  %v1846_v40 = vadd.f32 %v1845_v37, %v1844_v34  ;;  %1631 = vst [vmem:[#allocation5 + $0x48] sm:$0xff] %v895_v35   ;;  %v1064_v41 = vunpack.c.l.bf16 %v895_v35  ;;  %v1065_v42 = vunpack.c.h.bf16 %v895_v35 }
 0x160   :  { %v619_v43 = vadd.f32 %v1846_v40, %v1734_v39  ;;  %v1096_v46 = vsub.f32 %v872_v27, %v1064_v41  ;;  %v1097_v47 = vsub.f32 %v873_v28, %v1065_v42  ;;  %v874_v48 = vmul.f32 %v797_v45, %v616_v38  ;;  %v822_v28 = vpop.permute.xlu1 %821 }
 0x161   :  { %v1735_v50 = vpop.f32.mrb[44].mxu0 }
 0x162   :  { %v875_v49 = vmul.f32 %v802_v44, %v619_v43  ;;  %v1847_v51 = vpop.f32.mrb[44].mxu1  ;;  %v1591_v52 = vpack.c.bf16 %v1097_v47, %v1096_v46  ;;  %v1736_v53 = vpop.f32.mrb[45].mxu0 }
 0x163   :  { %v1848_v54 = vpop.f32.mrb[45].mxu1  ;;  %v1737_v56 = vadd.f32 %v1736_v53, %v1735_v50  ;;  %v1738_v58 = vpop.f32.mrb[46].mxu0 }
 0x164   :  { %v896_v55 = vpack.c.bf16 %v875_v49, %v874_v48  ;;  %v1849_v57 = vadd.f32 %v1848_v54, %v1847_v51  ;;  %v1850_v59 = vpop.f32.mrb[46].mxu1  ;;  %1646 = vst [vmem:[#allocation6 + $0x48] sm:$0xff] %v1591_v52   ;;  %v1739_v60 = vpop.f32.mrb[47].mxu0 }
 0x165   :  { %v1851_v61 = vpop.f32.mrb[47].mxu1  ;;  %v1740_v1 = vadd.f32 %v1739_v60, %v1738_v58  ;;  %v832_v53 = vpop.permute.xlu1 %831 }
 0x166   :  { %1632 = vst [vmem:[#allocation5 + $0x50] sm:$0xff] %v896_v55   ;;  %v1066_v62 = vunpack.c.l.bf16 %v896_v55  ;;  %v1067_v63 = vunpack.c.h.bf16 %v896_v55  ;;  %v624_v0 = vadd.f32 %v1849_v57, %v1737_v56  ;;  %v1852_v2 = vadd.f32 %v1851_v61, %v1850_v59  ;;  %v827_v54 = vpop.permute.xlu0 %826 }
 0x168   :  { %v1098_v3 = vsub.f32 %v874_v48, %v1066_v62  ;;  %v1099_v4 = vsub.f32 %v875_v49, %v1067_v63  ;;  %v627_v7 = vadd.f32 %v1852_v2, %v1740_v1  ;;  %v876_v11 = vmul.f32 %v807_v6, %v624_v0 }
 0x169   :  { %v1741_v9 = vpop.f32.mrb[48].mxu0 }
 0x16a   :  { %v1596_v8 = vpack.c.bf16 %v1099_v4, %v1098_v3  ;;  %v1853_v10 = vpop.f32.mrb[48].mxu1  ;;  %v877_v12 = vmul.f32 %v812_v5, %v627_v7  ;;  %v1742_v13 = vpop.f32.mrb[49].mxu0 }
 0x16b   :  { %v1854_v14 = vpop.f32.mrb[49].mxu1  ;;  %v1743_v15 = vadd.f32 %v1742_v13, %v1741_v9  ;;  %v1744_v17 = vpop.f32.mrb[50].mxu0 }
 0x16c   :  { %1647 = vst [vmem:[#allocation6 + $0x50] sm:$0xff] %v1596_v8   ;;  %v1855_v16 = vadd.f32 %v1854_v14, %v1853_v10  ;;  %v1856_v18 = vpop.f32.mrb[50].mxu1  ;;  %v897_v19 = vpack.c.bf16 %v877_v12, %v876_v11  ;;  %v1745_v20 = vpop.f32.mrb[51].mxu0 }
 0x16d   :  { %v1857_v21 = vpop.f32.mrb[51].mxu1  ;;  %v1746_v23 = vadd.f32 %v1745_v20, %v1744_v17  ;;  %v837_v13 = vpop.permute.xlu0 %836 }
 0x16e   :  { %v632_v22 = vadd.f32 %v1855_v16, %v1743_v15  ;;  %v1858_v24 = vadd.f32 %v1857_v21, %v1856_v18  ;;  %1633 = vst [vmem:[#allocation5 + $0x58] sm:$0xff] %v897_v19   ;;  %v1068_v25 = vunpack.c.l.bf16 %v897_v19  ;;  %v1069_v26 = vunpack.c.h.bf16 %v897_v19 }
 0x170   :  { %v635_v27 = vadd.f32 %v1858_v24, %v1746_v23  ;;  %v1100_v30 = vsub.f32 %v876_v11, %v1068_v25  ;;  %v1101_v31 = vsub.f32 %v877_v12, %v1069_v26  ;;  %v878_v32 = vmul.f32 %v817_v29, %v632_v22  ;;  %v842_v12 = vpop.permute.xlu1 %841 }
 0x171   :  { %v1747_v34 = vpop.f32.mrb[52].mxu0 }
 0x172   :  { %v879_v33 = vmul.f32 %v822_v28, %v635_v27  ;;  %v1859_v35 = vpop.f32.mrb[52].mxu1  ;;  %v1601_v36 = vpack.c.bf16 %v1101_v31, %v1100_v30  ;;  %v1748_v37 = vpop.f32.mrb[53].mxu0 }
 0x173   :  { %v1860_v38 = vpop.f32.mrb[53].mxu1  ;;  %v1749_v40 = vadd.f32 %v1748_v37, %v1747_v34  ;;  %v1750_v42 = vpop.f32.mrb[54].mxu0 }
 0x174   :  { %v898_v39 = vpack.c.bf16 %v879_v33, %v878_v32  ;;  %v1861_v41 = vadd.f32 %v1860_v38, %v1859_v35  ;;  %v1862_v43 = vpop.f32.mrb[54].mxu1  ;;  %1648 = vst [vmem:[#allocation6 + $0x58] sm:$0xff] %v1601_v36   ;;  %v1751_v44 = vpop.f32.mrb[55].mxu0 }
 0x175   :  { %v1863_v45 = vpop.f32.mrb[55].mxu1  ;;  %v1752_v49 = vadd.f32 %v1751_v44, %v1750_v42  ;;  %v852_v38 = vpop.permute.xlu1 %851 }
 0x176   :  { %1634 = vst [vmem:[#allocation5 + $0x60] sm:$0xff] %v898_v39   ;;  %v1070_v46 = vunpack.c.l.bf16 %v898_v39  ;;  %v1071_v47 = vunpack.c.h.bf16 %v898_v39  ;;  %v640_v48 = vadd.f32 %v1861_v41, %v1749_v40  ;;  %v1864_v50 = vadd.f32 %v1863_v45, %v1862_v43  ;;  %v847_v39 = vpop.permute.xlu0 %846 }
 0x178   :  { %v1102_v51 = vsub.f32 %v878_v32, %v1070_v46  ;;  %v1103_v52 = vsub.f32 %v879_v33, %v1071_v47  ;;  %v643_v55 = vadd.f32 %v1864_v50, %v1752_v49  ;;  %v880_v59 = vmul.f32 %v827_v54, %v640_v48 }
 0x179   :  { %v1753_v57 = vpop.f32.mrb[56].mxu0 }
 0x17a   :  { %v1606_v56 = vpack.c.bf16 %v1103_v52, %v1102_v51  ;;  %v1865_v58 = vpop.f32.mrb[56].mxu1  ;;  %v881_v60 = vmul.f32 %v832_v53, %v643_v55  ;;  %v1754_v61 = vpop.f32.mrb[57].mxu0 }
 0x17b   :  { %v1866_v62 = vpop.f32.mrb[57].mxu1  ;;  %v1755_v63 = vadd.f32 %v1754_v61, %v1753_v57  ;;  %v1756_v1 = vpop.f32.mrb[58].mxu0 }
 0x17c   :  { %1649 = vst [vmem:[#allocation6 + $0x60] sm:$0xff] %v1606_v56   ;;  %v1867_v0 = vadd.f32 %v1866_v62, %v1865_v58  ;;  %v1868_v2 = vpop.f32.mrb[58].mxu1  ;;  %v899_v3 = vpack.c.bf16 %v881_v60, %v880_v59  ;;  %v1757_v4 = vpop.f32.mrb[59].mxu0 }
 0x17d   :  { %v1869_v5 = vpop.f32.mrb[59].mxu1  ;;  %v1758_v7 = vadd.f32 %v1757_v4, %v1756_v1 }
 0x17e   :  { %v648_v6 = vadd.f32 %v1867_v0, %v1755_v63  ;;  %v1870_v8 = vadd.f32 %v1869_v5, %v1868_v2  ;;  %1635 = vst [vmem:[#allocation5 + $0x68] sm:$0xff] %v899_v3   ;;  %v1072_v9 = vunpack.c.l.bf16 %v899_v3  ;;  %v1073_v10 = vunpack.c.h.bf16 %v899_v3 }
 0x180   :  { %v651_v11 = vadd.f32 %v1870_v8, %v1758_v7  ;;  %v1104_v14 = vsub.f32 %v880_v59, %v1072_v9  ;;  %v1105_v15 = vsub.f32 %v881_v60, %v1073_v10  ;;  %v882_v16 = vmul.f32 %v837_v13, %v648_v6 }
 0x181   :  { %v1759_v18 = vpop.f32.mrb[60].mxu0 }
 0x182   :  { %v883_v17 = vmul.f32 %v842_v12, %v651_v11  ;;  %v1871_v19 = vpop.f32.mrb[60].mxu1  ;;  %v1611_v20 = vpack.c.bf16 %v1105_v15, %v1104_v14  ;;  %v1760_v21 = vpop.f32.mrb[61].mxu0 }
 0x183   :  { %v1872_v22 = vpop.f32.mrb[61].mxu1  ;;  %v1761_v24 = vadd.f32 %v1760_v21, %v1759_v18  ;;  %v1762_v26 = vpop.f32.mrb[62].mxu0 }
 0x184   :  { %v900_v23 = vpack.c.bf16 %v883_v17, %v882_v16  ;;  %v1873_v25 = vadd.f32 %v1872_v22, %v1871_v19  ;;  %v1874_v27 = vpop.f32.mrb[62].mxu1  ;;  %1650 = vst [vmem:[#allocation6 + $0x68] sm:$0xff] %v1611_v20   ;;  %v1763_v28 = vpop.f32.mrb[63].mxu0 }
 0x185   :  { %v1875_v29 = vpop.f32.mrb[63].mxu1  ;;  %v1764_v33 = vadd.f32 %v1763_v28, %v1762_v26 }
 0x186   :  { %1636 = vst [vmem:[#allocation5 + $0x70] sm:$0xff] %v900_v23   ;;  %v1074_v30 = vunpack.c.l.bf16 %v900_v23  ;;  %v1075_v31 = vunpack.c.h.bf16 %v900_v23  ;;  %v656_v32 = vadd.f32 %v1873_v25, %v1761_v24  ;;  %v1876_v34 = vadd.f32 %v1875_v29, %v1874_v27 }
 0x188   :  { %v1106_v35 = vsub.f32 %v882_v16, %v1074_v30  ;;  %v1107_v36 = vsub.f32 %v883_v17, %v1075_v31  ;;  %v659_v37 = vadd.f32 %v1876_v34, %v1764_v33  ;;  %v884_v41 = vmul.f32 %v847_v39, %v656_v32 }
 0x18a   :  { %v1616_v40 = vpack.c.bf16 %v1107_v36, %v1106_v35  ;;  %v885_v42 = vmul.f32 %v852_v38, %v659_v37 }
 0x18c   :  { %1651 = vst [vmem:[#allocation6 + $0x70] sm:$0xff] %v1616_v40   ;;  %v901_v43 = vpack.c.bf16 %v885_v42, %v884_v41 }
 0x18e   :  { %1637 = vst [vmem:[#allocation5 + $0x78] sm:$0xff] %v901_v43   ;;  %v1076_v44 = vunpack.c.l.bf16 %v901_v43  ;;  %v1077_v45 = vunpack.c.h.bf16 %v901_v43 }
 0x18f   :  { %1950 = shalt.err (!%p1947_p12)
}
 0x190   :  { %s1951_s15 = scalar_lea.hbm %s2266_s4, 2048 }
 0x191   :  { %p1952_p13 = scmp.ne.s32.totalorder %s2266_s4, %s1951_s15  ;;  %p1955_p0 = scmp.lt.u32.totalorder %s1951_s15, %s2266_s4 }
 0x193   :  { %p1957_p1 = pnand %p1955_p0, %p1952_p13 }
 0x195   :  { %1960 = shalt.err (!%p1957_p1)
}
 0x196   :  { %1281 = dma.vmem_to_hbm [thread:$0]  %s1276_s10, 2048, %s2266_s4, [#allocation4], %s1990_s28, %s1990_s28, %s1991_s29   ;;  %v1108_v46 = vsub.f32 %v884_v41, %v1076_v44  ;;  %v1109_v47 = vsub.f32 %v885_v42, %v1077_v45 }
 0x197   :  { %s1961_s21 = scalar_lea.vmem %s1288_s11, 2048  ;;  %p1966_p3 = scmp.lt.s32.totalorder %s1288_s11, %s1288_s11 }
 0x198   :  { %v1621_v48 = vpack.c.bf16 %v1109_v47, %v1108_v46  ;;  %p1962_p2 = scmp.ne.s32.totalorder %s1288_s11, %s1961_s21  ;;  %p1967_p4 = scmp.lt.s32.totalorder %s1961_s21, %s1961_s21 }
 0x19a   :  { %1652 = vst [vmem:[#allocation6 + $0x78] sm:$0xff] %v1621_v48   ;;  %p1968_p5 = por %p1967_p4, %p1966_p3 }
 0x19c   :  { %p1969_p6 = pnand %p1968_p5, %p1962_p2 }
 0x19e   :  { %1972 = shalt.err (!%p1969_p6)
}
 0x19f   :  { %s1973_s24 = scalar_lea.hbm %s2267_s5, 2048 }
 0x1a0   :  { %p1974_p7 = scmp.ne.s32.totalorder %s2267_s5, %s1973_s24  ;;  %p1977_p8 = scmp.lt.u32.totalorder %s1973_s24, %s2267_s5 }
 0x1a2   :  { %p1979_p9 = pnand %p1977_p8, %p1974_p7 }
 0x1a4   :  { %1982 = shalt.err (!%p1979_p9)
}
 0x1a5   :  { %1293 = dma.vmem_to_hbm [thread:$0]  %s1288_s11, 2048, %s2267_s5, [#allocation7], %s1990_s28, %s1990_s28, %s1991_s29  }
 0x1a6   :  { %1985 = dma.done.wait [#allocation4], 2048  }
 0x1a7   :  { %1986 = vsyncadd [#allocation4], 4294965248 }
 0x1a8   :  { %1987 = dma.done.wait [#allocation7], 2048  }
 0x1a9   :  { %1988 = vsyncadd [#allocation7], 4294965248 }
 0x1aa   :  { %1300 = vsyncpa [#allocation3], 1 }
 0x1ab   :  { %1301 = vsyncpa [#allocation4], 1 }
 0x1ac   :  { %1302 = vsyncpa [#allocation7], 1 }

</bundles_post_ra>
